<compile_context>
chip_gen: v6e
topology: v6e:2x2x1
jax: 0.10.0
libtpu: 0.0.40
codegen_flags: <defaults>
</compile_context>

<pallas_src>
import functools

import jax
import jax.numpy as jnp
from jax import lax
from jax.experimental import pallas as pl
from jax.experimental.pallas import tpu as pltpu

LN_EPS = 1e-5
H1, H2, H3 = 64, 128, 64


def _layernorm(x, gamma, beta):
    # Centered-variance form (numerically safer than E[x^2]-E[x]^2).
    mu = jnp.mean(x, axis=-1, keepdims=True)
    xc = x - mu
    var = jnp.mean(xc * xc, axis=-1, keepdims=True)
    inv = lax.rsqrt(var + LN_EPS)          # EUP rsqrt; reduces go to XLU
    return xc * inv * gamma + beta


def _policy_kernel(
    state_ref,
    w1_ref, b1_ref, g1_ref, be1_ref,
    w2_ref, b2_ref, g2_ref, be2_ref,
    w3_ref, b3_ref, g3_ref, be3_ref,
    wh_ref, bh_ref,
    out_ref,
    *, action_dim,
):
    x = state_ref[...]

    # Layer 1: Linear(state_dim, 64) -> LayerNorm(64) -> ReLU
    h = jnp.dot(x.astype(w1_ref.dtype), w1_ref[...],
                preferred_element_type=jnp.float32) + b1_ref[...]
    h = jnp.maximum(_layernorm(h, g1_ref[...], be1_ref[...]), 0.0)

    # Layer 2: Linear(64, 128) -> LayerNorm(128) -> ReLU
    h = jnp.dot(h.astype(w2_ref.dtype), w2_ref[...],
                preferred_element_type=jnp.float32) + b2_ref[...]
    h = jnp.maximum(_layernorm(h, g2_ref[...], be2_ref[...]), 0.0)

    # Layer 3: Linear(128, 64) -> LayerNorm(64) -> ReLU
    h = jnp.dot(h.astype(w3_ref.dtype), w3_ref[...],
                preferred_element_type=jnp.float32) + b3_ref[...]
    h = jnp.maximum(_layernorm(h, g3_ref[...], be3_ref[...]), 0.0)

    # Fused heads: columns are [mean (action_dim) | log_std (action_dim)].
    head = jnp.dot(h.astype(wh_ref.dtype), wh_ref[...],
                   preferred_element_type=jnp.float32) + bh_ref[...]

    # Clamp only the log_std columns (after the f32 accumulate, before store).
    col = lax.broadcasted_iota(jnp.int32, head.shape, 1)
    head = jnp.where(col >= action_dim, jnp.clip(head, -1.0, 2.0), head)
    out_ref[...] = head.astype(out_ref.dtype)


def init_params(key, state_dim, action_dim, init_log_std=0.0):
    """Deterministic synthetic parameters (shapes follow the nn.Module)."""
    ks = jax.random.split(key, 10)

    def linear(kw, kb, fan_in, fan_out):
        bound = 1.0 / jnp.sqrt(fan_in)
        w = jax.random.uniform(kw, (fan_in, fan_out), jnp.float32, -bound, bound)
        b = jax.random.uniform(kb, (1, fan_out), jnp.float32, -bound, bound)
        return w, b

    w1, b1 = linear(ks[0], ks[1], state_dim, H1)
    w2, b2 = linear(ks[2], ks[3], H1, H2)
    w3, b3 = linear(ks[4], ks[5], H2, H3)
    wm, bm = linear(ks[6], ks[7], H3, action_dim)
    ws, bs = linear(ks[8], ks[9], H3, action_dim)
    # log_std_layer bias initialized to init_log_std (as in the module)
    bs = jnp.full_like(bs, init_log_std)

    # LayerNorm affine params (PyTorch default init: weight=1, bias=0)
    g1, be1 = jnp.ones((1, H1), jnp.float32), jnp.zeros((1, H1), jnp.float32)
    g2, be2 = jnp.ones((1, H2), jnp.float32), jnp.zeros((1, H2), jnp.float32)
    g3, be3 = jnp.ones((1, H3), jnp.float32), jnp.zeros((1, H3), jnp.float32)

    return dict(
        w1=w1, b1=b1, g1=g1, be1=be1,
        w2=w2, b2=b2, g2=g2, be2=be2,
        w3=w3, b3=b3, g3=g3, be3=be3,
        wm=wm, bm=bm, ws=ws, bs=bs,
    )


@functools.partial(
    jax.jit, static_argnames=("action_dim", "block_rows", "matmul_dtype"))
def policy_forward(state, params, *, action_dim, block_rows=4096,
                   matmul_dtype=jnp.bfloat16):
    batch, state_dim = state.shape
    out_dim = 2 * action_dim

    # Batch tile: full batch if tiny; otherwise split into >= 2 tiles (so both
    # v7x TensorCores get work under "parallel") capped at block_rows, with tm
    # kept a multiple of 8.
    if batch <= 8:
        tm = batch
    else:
        tm = min(block_rows, 8 * pl.cdiv(pl.cdiv(batch, 2), 8))
    grid = (pl.cdiv(batch, tm),)

    w1 = params["w1"].astype(matmul_dtype)
    w2 = params["w2"].astype(matmul_dtype)
    w3 = params["w3"].astype(matmul_dtype)
    # Fused head weight (H3, 2*action_dim); biases stay f32 (post-accumulate add).
    wh = jnp.concatenate([params["wm"], params["ws"]], axis=1).astype(matmul_dtype)
    bh = jnp.concatenate([params["bm"], params["bs"]], axis=1)

    def resident(shape):
        # Same block every grid step -> stays VMEM-resident across the grid.
        return pl.BlockSpec(shape, lambda i: (0, 0))

    in_specs = [
        pl.BlockSpec((tm, state_dim), lambda i: (i, 0)),
        resident((state_dim, H1)), resident((1, H1)),
        resident((1, H1)), resident((1, H1)),
        resident((H1, H2)), resident((1, H2)),
        resident((1, H2)), resident((1, H2)),
        resident((H2, H3)), resident((1, H3)),
        resident((1, H3)), resident((1, H3)),
        resident((H3, out_dim)), resident((1, out_dim)),
    ]
    out_specs = pl.BlockSpec((tm, out_dim), lambda i: (i, 0))

    flops = 2 * batch * (state_dim * H1 + H1 * H2 + H2 * H3 + H3 * out_dim)
    weight_bytes = sum(int(a.size) * a.dtype.itemsize for a in (w1, w2, w3, wh))
    bytes_accessed = (int(state.size) * state.dtype.itemsize
                      + weight_bytes + batch * out_dim * 4)

    head = pl.pallas_call(
        functools.partial(_policy_kernel, action_dim=action_dim),
        grid=grid,
        in_specs=in_specs,
        out_specs=out_specs,
        out_shape=jax.ShapeDtypeStruct((batch, out_dim), jnp.float32),
        compiler_params=pltpu.CompilerParams(
            dimension_semantics=("parallel",),      # megacore split on v7x
            vmem_limit_bytes=48 * 1024 * 1024,      # < 64 MiB physical on v7x
        ),
        cost_estimate=pl.CostEstimate(
            flops=flops,
            transcendentals=3 * batch,              # one rsqrt per row per LN
            bytes_accessed=bytes_accessed,
        ),
    )(state,
      w1, params["b1"], params["g1"], params["be1"],
      w2, params["b2"], params["g2"], params["be2"],
      w3, params["b3"], params["g3"], params["be3"],
      wh, bh)

    # Clamp already applied in-kernel; wrapper just slices the narrow output.
    mean = head[:, :action_dim]
    log_std = head[:, action_dim:]
    return mean, log_std


def policy_forward_ref(state, params):
    """Pure-JAX reference for validation."""
    h = state @ params["w1"] + params["b1"]
    h = jnp.maximum(_layernorm(h, params["g1"], params["be1"]), 0.0)
    h = h @ params["w2"] + params["b2"]
    h = jnp.maximum(_layernorm(h, params["g2"], params["be2"]), 0.0)
    h = h @ params["w3"] + params["b3"]
    h = jnp.maximum(_layernorm(h, params["g3"], params["be3"]), 0.0)
    mean = h @ params["wm"] + params["bm"]
    log_std = jnp.clip(h @ params["ws"] + params["bs"], -1.0, 2.0)
    return mean, log_std


if __name__ == "__main__":
    state_dim, action_dim = 12, 3
    key = jax.random.PRNGKey(0)
    k_params, k_small, k_big = jax.random.split(key, 3)
    params = init_params(k_params, state_dim, action_dim, init_log_std=0.0)

    # Small batch (single grid step), strict f32 validation.
    state = jax.random.normal(k_small, (8, state_dim), jnp.float32)
    mean, log_std = policy_forward(state, params, action_dim=action_dim,
                                   matmul_dtype=jnp.float32)
    jax.block_until_ready((mean, log_std))
    mean_ref, log_std_ref = policy_forward_ref(state, params)
    assert jnp.allclose(mean, mean_ref, atol=1e-5, rtol=1e-5)
    assert jnp.allclose(log_std, log_std_ref, atol=1e-5, rtol=1e-5)
    assert mean.shape == (8, action_dim) and log_std.shape == (8, action_dim)
    assert float(jnp.min(log_std)) >= -1.0 and float(jnp.max(log_std)) <= 2.0

    # Multi-step grid with a partial last tile (272 rows, 128-row tiles), f32.
    state_big = jax.random.normal(k_big, (272, state_dim), jnp.float32)
    mean_b, log_std_b = policy_forward(state_big, params, action_dim=action_dim,
                                       block_rows=128,
                                       matmul_dtype=jnp.float32)
    jax.block_until_ready((mean_b, log_std_b))
    mean_b_ref, log_std_b_ref = policy_forward_ref(state_big, params)
    assert jnp.allclose(mean_b, mean_b_ref, atol=1e-5, rtol=1e-5)
    assert jnp.allclose(log_std_b, log_std_b_ref, atol=1e-5, rtol=1e-5)

    # Default fast path: bf16 MXU inputs, f32 accumulation/LayerNorm, large tile
    # (grid still splits into 2 steps for v7x). Loose tolerance vs f32 reference.
    mean_bf, log_std_bf = policy_forward(state_big, params, action_dim=action_dim)
    jax.block_until_ready((mean_bf, log_std_bf))
    assert jnp.allclose(mean_bf, mean_b_ref, atol=5e-2, rtol=5e-2)
    assert jnp.allclose(log_std_bf, log_std_b_ref, atol=5e-2, rtol=5e-2)
    assert float(jnp.min(log_std_bf)) >= -1.0 and float(jnp.max(log_std_bf)) <= 2.0

    print("KERNEL_OK")
</pallas_src>

<mosaic_0001>
module attributes {stable_mosaic.version = 11 : i64} {
  func.func @_policy_kernel(%arg0: i32, %arg1: memref<8x12xf32, #tpu.memory_space<vmem>>, %arg2: memref<12x64xf32, #tpu.memory_space<vmem>>, %arg3: memref<1x64xf32, #tpu.memory_space<vmem>>, %arg4: memref<1x64xf32, #tpu.memory_space<vmem>>, %arg5: memref<1x64xf32, #tpu.memory_space<vmem>>, %arg6: memref<64x128xf32, #tpu.memory_space<vmem>>, %arg7: memref<1x128xf32, #tpu.memory_space<vmem>>, %arg8: memref<1x128xf32, #tpu.memory_space<vmem>>, %arg9: memref<1x128xf32, #tpu.memory_space<vmem>>, %arg10: memref<128x64xf32, #tpu.memory_space<vmem>>, %arg11: memref<1x64xf32, #tpu.memory_space<vmem>>, %arg12: memref<1x64xf32, #tpu.memory_space<vmem>>, %arg13: memref<1x64xf32, #tpu.memory_space<vmem>>, %arg14: memref<64x6xf32, #tpu.memory_space<vmem>>, %arg15: memref<1x6xf32, #tpu.memory_space<vmem>>, %arg16: memref<8x6xf32, #tpu.memory_space<vmem>>) attributes {dimension_semantics = [#tpu.dimension_semantics<parallel>], iteration_bounds = array<i64: 1>, scalar_prefetch = 0 : i64, scratch_operands = 0 : i64, tpu.core_type = #tpu.core_type<tc>, window_params = [{transform_indices = @transform_0, window_bounds = array<i64: 8, 12>}, {pipeline_mode = #tpu.pipeline_mode<synchronous>, transform_indices = @transform_1, window_bounds = array<i64: 12, 64>}, {pipeline_mode = #tpu.pipeline_mode<synchronous>, transform_indices = @transform_2, window_bounds = array<i64: 1, 64>}, {pipeline_mode = #tpu.pipeline_mode<synchronous>, transform_indices = @transform_3, window_bounds = array<i64: 1, 64>}, {pipeline_mode = #tpu.pipeline_mode<synchronous>, transform_indices = @transform_4, window_bounds = array<i64: 1, 64>}, {pipeline_mode = #tpu.pipeline_mode<synchronous>, transform_indices = @transform_5, window_bounds = array<i64: 64, 128>}, {pipeline_mode = #tpu.pipeline_mode<synchronous>, transform_indices = @transform_6, window_bounds = array<i64: 1, 128>}, {pipeline_mode = #tpu.pipeline_mode<synchronous>, transform_indices = @transform_7, window_bounds = array<i64: 1, 128>}, {pipeline_mode = #tpu.pipeline_mode<synchronous>, transform_indices = @transform_8, window_bounds = array<i64: 1, 128>}, {pipeline_mode = #tpu.pipeline_mode<synchronous>, transform_indices = @transform_9, window_bounds = array<i64: 128, 64>}, {pipeline_mode = #tpu.pipeline_mode<synchronous>, transform_indices = @transform_10, window_bounds = array<i64: 1, 64>}, {pipeline_mode = #tpu.pipeline_mode<synchronous>, transform_indices = @transform_11, window_bounds = array<i64: 1, 64>}, {pipeline_mode = #tpu.pipeline_mode<synchronous>, transform_indices = @transform_12, window_bounds = array<i64: 1, 64>}, {pipeline_mode = #tpu.pipeline_mode<synchronous>, transform_indices = @transform_13, window_bounds = array<i64: 64, 6>}, {pipeline_mode = #tpu.pipeline_mode<synchronous>, transform_indices = @transform_14, window_bounds = array<i64: 1, 6>}, {transform_indices = @transform_15, window_bounds = array<i64: 8, 6>}]} {
    %c0 = arith.constant 0 : index
    %c0_0 = arith.constant 0 : index
    %0 = vector.load %arg1[%c0, %c0_0] : memref<8x12xf32, #tpu.memory_space<vmem>>, vector<8x12xf32>
    %c0_1 = arith.constant 0 : index
    %c0_2 = arith.constant 0 : index
    %1 = vector.load %arg2[%c0_1, %c0_2] : memref<12x64xf32, #tpu.memory_space<vmem>>, vector<12x64xf32>
    %cst = arith.constant dense<0.000000e+00> : vector<8x64xf32>
    %2 = tpu.matmul %0, %1, %cst {dimension_numbers = #tpu.dot_dimension_numbers<[1], [0], [0], [1], [0, 0, 1, 1], [], []>} : vector<8x12xf32>, vector<12x64xf32>, vector<8x64xf32> -> vector<8x64xf32>
    %c0_3 = arith.constant 0 : index
    %c0_4 = arith.constant 0 : index
    %3 = vector.load %arg3[%c0_3, %c0_4] : memref<1x64xf32, #tpu.memory_space<vmem>>, vector<1x64xf32>
    %4 = vector.broadcast %3 : vector<1x64xf32> to vector<8x64xf32>
    %5 = arith.addf %2, %4 : vector<8x64xf32>
    %c0_5 = arith.constant 0 : index
    %c0_6 = arith.constant 0 : index
    %6 = vector.load %arg4[%c0_5, %c0_6] : memref<1x64xf32, #tpu.memory_space<vmem>>, vector<1x64xf32>
    %c0_7 = arith.constant 0 : index
    %c0_8 = arith.constant 0 : index
    %7 = vector.load %arg5[%c0_7, %c0_8] : memref<1x64xf32, #tpu.memory_space<vmem>>, vector<1x64xf32>
    %cst_9 = arith.constant dense<0.000000e+00> : vector<8xf32>
    %8 = vector.multi_reduction <add>, %5, %cst_9 [1] : vector<8x64xf32> to vector<8xf32>
    %9 = vector.shape_cast %8 : vector<8xf32> to vector<8x1xf32>
    %cst_10 = arith.constant 6.400000e+01 : f32
    %10 = vector.broadcast %cst_10 : f32 to vector<8x1xf32>
    %11 = arith.divf %9, %10 : vector<8x1xf32>
    %12 = vector.broadcast %11 : vector<8x1xf32> to vector<8x64xf32>
    %13 = arith.subf %5, %12 : vector<8x64xf32>
    %14 = arith.mulf %13, %13 : vector<8x64xf32>
    %cst_11 = arith.constant dense<0.000000e+00> : vector<8xf32>
    %15 = vector.multi_reduction <add>, %14, %cst_11 [1] : vector<8x64xf32> to vector<8xf32>
    %16 = vector.shape_cast %15 : vector<8xf32> to vector<8x1xf32>
    %cst_12 = arith.constant 6.400000e+01 : f32
    %17 = vector.broadcast %cst_12 : f32 to vector<8x1xf32>
    %18 = arith.divf %16, %17 : vector<8x1xf32>
    %cst_13 = arith.constant 9.99999974E-6 : f32
    %19 = vector.broadcast %cst_13 : f32 to vector<8x1xf32>
    %20 = arith.addf %18, %19 : vector<8x1xf32>
    %21 = math.rsqrt %20 : vector<8x1xf32>
    %22 = vector.broadcast %21 : vector<8x1xf32> to vector<8x64xf32>
    %23 = arith.mulf %13, %22 : vector<8x64xf32>
    %24 = vector.broadcast %6 : vector<1x64xf32> to vector<8x64xf32>
    %25 = arith.mulf %23, %24 : vector<8x64xf32>
    %26 = vector.broadcast %7 : vector<1x64xf32> to vector<8x64xf32>
    %27 = arith.addf %25, %26 : vector<8x64xf32>
    %cst_14 = arith.constant 0.000000e+00 : f32
    %28 = vector.broadcast %cst_14 : f32 to vector<8x64xf32>
    %29 = arith.maximumf %27, %28 : vector<8x64xf32>
    %c0_15 = arith.constant 0 : index
    %c0_16 = arith.constant 0 : index
    %30 = vector.load %arg6[%c0_15, %c0_16] : memref<64x128xf32, #tpu.memory_space<vmem>>, vector<64x128xf32>
    %cst_17 = arith.constant dense<0.000000e+00> : vector<8x128xf32>
    %31 = tpu.matmul %29, %30, %cst_17 {dimension_numbers = #tpu.dot_dimension_numbers<[1], [0], [0], [1], [0, 0, 1, 1], [], []>} : vector<8x64xf32>, vector<64x128xf32>, vector<8x128xf32> -> vector<8x128xf32>
    %c0_18 = arith.constant 0 : index
    %c0_19 = arith.constant 0 : index
    %32 = vector.load %arg7[%c0_18, %c0_19] : memref<1x128xf32, #tpu.memory_space<vmem>>, vector<1x128xf32>
    %33 = vector.broadcast %32 : vector<1x128xf32> to vector<8x128xf32>
    %34 = arith.addf %31, %33 : vector<8x128xf32>
    %c0_20 = arith.constant 0 : index
    %c0_21 = arith.constant 0 : index
    %35 = vector.load %arg8[%c0_20, %c0_21] : memref<1x128xf32, #tpu.memory_space<vmem>>, vector<1x128xf32>
    %c0_22 = arith.constant 0 : index
    %c0_23 = arith.constant 0 : index
    %36 = vector.load %arg9[%c0_22, %c0_23] : memref<1x128xf32, #tpu.memory_space<vmem>>, vector<1x128xf32>
    %cst_24 = arith.constant dense<0.000000e+00> : vector<8xf32>
    %37 = vector.multi_reduction <add>, %34, %cst_24 [1] : vector<8x128xf32> to vector<8xf32>
    %38 = vector.shape_cast %37 : vector<8xf32> to vector<8x1xf32>
    %cst_25 = arith.constant 1.280000e+02 : f32
    %39 = vector.broadcast %cst_25 : f32 to vector<8x1xf32>
    %40 = arith.divf %38, %39 : vector<8x1xf32>
    %41 = vector.broadcast %40 : vector<8x1xf32> to vector<8x128xf32>
    %42 = arith.subf %34, %41 : vector<8x128xf32>
    %43 = arith.mulf %42, %42 : vector<8x128xf32>
    %cst_26 = arith.constant dense<0.000000e+00> : vector<8xf32>
    %44 = vector.multi_reduction <add>, %43, %cst_26 [1] : vector<8x128xf32> to vector<8xf32>
    %45 = vector.shape_cast %44 : vector<8xf32> to vector<8x1xf32>
    %cst_27 = arith.constant 1.280000e+02 : f32
    %46 = vector.broadcast %cst_27 : f32 to vector<8x1xf32>
    %47 = arith.divf %45, %46 : vector<8x1xf32>
    %cst_28 = arith.constant 9.99999974E-6 : f32
    %48 = vector.broadcast %cst_28 : f32 to vector<8x1xf32>
    %49 = arith.addf %47, %48 : vector<8x1xf32>
    %50 = math.rsqrt %49 : vector<8x1xf32>
    %51 = vector.broadcast %50 : vector<8x1xf32> to vector<8x128xf32>
    %52 = arith.mulf %42, %51 : vector<8x128xf32>
    %53 = vector.broadcast %35 : vector<1x128xf32> to vector<8x128xf32>
    %54 = arith.mulf %52, %53 : vector<8x128xf32>
    %55 = vector.broadcast %36 : vector<1x128xf32> to vector<8x128xf32>
    %56 = arith.addf %54, %55 : vector<8x128xf32>
    %cst_29 = arith.constant 0.000000e+00 : f32
    %57 = vector.broadcast %cst_29 : f32 to vector<8x128xf32>
    %58 = arith.maximumf %56, %57 : vector<8x128xf32>
    %c0_30 = arith.constant 0 : index
    %c0_31 = arith.constant 0 : index
    %59 = vector.load %arg10[%c0_30, %c0_31] : memref<128x64xf32, #tpu.memory_space<vmem>>, vector<128x64xf32>
    %cst_32 = arith.constant dense<0.000000e+00> : vector<8x64xf32>
    %60 = tpu.matmul %58, %59, %cst_32 {dimension_numbers = #tpu.dot_dimension_numbers<[1], [0], [0], [1], [0, 0, 1, 1], [], []>} : vector<8x128xf32>, vector<128x64xf32>, vector<8x64xf32> -> vector<8x64xf32>
    %c0_33 = arith.constant 0 : index
    %c0_34 = arith.constant 0 : index
    %61 = vector.load %arg11[%c0_33, %c0_34] : memref<1x64xf32, #tpu.memory_space<vmem>>, vector<1x64xf32>
    %62 = vector.broadcast %61 : vector<1x64xf32> to vector<8x64xf32>
    %63 = arith.addf %60, %62 : vector<8x64xf32>
    %c0_35 = arith.constant 0 : index
    %c0_36 = arith.constant 0 : index
    %64 = vector.load %arg12[%c0_35, %c0_36] : memref<1x64xf32, #tpu.memory_space<vmem>>, vector<1x64xf32>
    %c0_37 = arith.constant 0 : index
    %c0_38 = arith.constant 0 : index
    %65 = vector.load %arg13[%c0_37, %c0_38] : memref<1x64xf32, #tpu.memory_space<vmem>>, vector<1x64xf32>
    %cst_39 = arith.constant dense<0.000000e+00> : vector<8xf32>
    %66 = vector.multi_reduction <add>, %63, %cst_39 [1] : vector<8x64xf32> to vector<8xf32>
    %67 = vector.shape_cast %66 : vector<8xf32> to vector<8x1xf32>
    %cst_40 = arith.constant 6.400000e+01 : f32
    %68 = vector.broadcast %cst_40 : f32 to vector<8x1xf32>
    %69 = arith.divf %67, %68 : vector<8x1xf32>
    %70 = vector.broadcast %69 : vector<8x1xf32> to vector<8x64xf32>
    %71 = arith.subf %63, %70 : vector<8x64xf32>
    %72 = arith.mulf %71, %71 : vector<8x64xf32>
    %cst_41 = arith.constant dense<0.000000e+00> : vector<8xf32>
    %73 = vector.multi_reduction <add>, %72, %cst_41 [1] : vector<8x64xf32> to vector<8xf32>
    %74 = vector.shape_cast %73 : vector<8xf32> to vector<8x1xf32>
    %cst_42 = arith.constant 6.400000e+01 : f32
    %75 = vector.broadcast %cst_42 : f32 to vector<8x1xf32>
    %76 = arith.divf %74, %75 : vector<8x1xf32>
    %cst_43 = arith.constant 9.99999974E-6 : f32
    %77 = vector.broadcast %cst_43 : f32 to vector<8x1xf32>
    %78 = arith.addf %76, %77 : vector<8x1xf32>
    %79 = math.rsqrt %78 : vector<8x1xf32>
    %80 = vector.broadcast %79 : vector<8x1xf32> to vector<8x64xf32>
    %81 = arith.mulf %71, %80 : vector<8x64xf32>
    %82 = vector.broadcast %64 : vector<1x64xf32> to vector<8x64xf32>
    %83 = arith.mulf %81, %82 : vector<8x64xf32>
    %84 = vector.broadcast %65 : vector<1x64xf32> to vector<8x64xf32>
    %85 = arith.addf %83, %84 : vector<8x64xf32>
    %cst_44 = arith.constant 0.000000e+00 : f32
    %86 = vector.broadcast %cst_44 : f32 to vector<8x64xf32>
    %87 = arith.maximumf %85, %86 : vector<8x64xf32>
    %c0_45 = arith.constant 0 : index
    %c0_46 = arith.constant 0 : index
    %88 = vector.load %arg14[%c0_45, %c0_46] : memref<64x6xf32, #tpu.memory_space<vmem>>, vector<64x6xf32>
    %cst_47 = arith.constant dense<0.000000e+00> : vector<8x6xf32>
    %89 = tpu.matmul %87, %88, %cst_47 {dimension_numbers = #tpu.dot_dimension_numbers<[1], [0], [0], [1], [0, 0, 1, 1], [], []>} : vector<8x64xf32>, vector<64x6xf32>, vector<8x6xf32> -> vector<8x6xf32>
    %c0_48 = arith.constant 0 : index
    %c0_49 = arith.constant 0 : index
    %90 = vector.load %arg15[%c0_48, %c0_49] : memref<1x6xf32, #tpu.memory_space<vmem>>, vector<1x6xf32>
    %91 = vector.broadcast %90 : vector<1x6xf32> to vector<8x6xf32>
    %92 = arith.addf %89, %91 : vector<8x6xf32>
    %93 = tpu.iota {dimensions = array<i32: 1>} : vector<8x6xi32>
    %c3_i32 = arith.constant 3 : i32
    %94 = vector.broadcast %c3_i32 : i32 to vector<8x6xi32>
    %95 = arith.cmpi sge, %93, %94 : vector<8x6xi32>
    %cst_50 = arith.constant -1.000000e+00 : f32
    %cst_51 = arith.constant 2.000000e+00 : f32
    %96 = vector.broadcast %cst_50 : f32 to vector<8x6xf32>
    %97 = arith.maximumf %96, %92 : vector<8x6xf32>
    %98 = vector.broadcast %cst_51 : f32 to vector<8x6xf32>
    %99 = arith.minimumf %98, %97 : vector<8x6xf32>
    %100 = arith.select %95, %99, %92 : vector<8x6xi1>, vector<8x6xf32>
    %c0_52 = arith.constant 0 : index
    %c0_53 = arith.constant 0 : index
    %101 = vector.load %arg16[%c0_52, %c0_53] : memref<8x6xf32, #tpu.memory_space<vmem>>, vector<8x6xf32>
    tpu.vector_store %arg16[%c0_52, %c0_53], %100 {strides = array<i32>} : memref<8x6xf32, #tpu.memory_space<vmem>>, vector<8x6xf32>,
    return
  }
  func.func @transform_0(%arg0: i32) -> (i32, i32) {
    %c0_i32 = arith.constant 0 : i32
    %c0_i32_0 = arith.constant 0 : i32
    return %arg0, %c0_i32 : i32, i32
  }
  func.func @transform_1(%arg0: i32) -> (i32, i32) {
    %c0_i32 = arith.constant 0 : i32
    %c0_i32_0 = arith.constant 0 : i32
    %c0_i32_1 = arith.constant 0 : i32
    return %c0_i32, %c0_i32_0 : i32, i32
  }
  func.func @transform_2(%arg0: i32) -> (i32, i32) {
    %c0_i32 = arith.constant 0 : i32
    %c0_i32_0 = arith.constant 0 : i32
    %c0_i32_1 = arith.constant 0 : i32
    return %c0_i32, %c0_i32_0 : i32, i32
  }
  func.func @transform_3(%arg0: i32) -> (i32, i32) {
    %c0_i32 = arith.constant 0 : i32
    %c0_i32_0 = arith.constant 0 : i32
    %c0_i32_1 = arith.constant 0 : i32
    return %c0_i32, %c0_i32_0 : i32, i32
  }
  func.func @transform_4(%arg0: i32) -> (i32, i32) {
    %c0_i32 = arith.constant 0 : i32
    %c0_i32_0 = arith.constant 0 : i32
    %c0_i32_1 = arith.constant 0 : i32
    return %c0_i32, %c0_i32_0 : i32, i32
  }
  func.func @transform_5(%arg0: i32) -> (i32, i32) {
    %c0_i32 = arith.constant 0 : i32
    %c0_i32_0 = arith.constant 0 : i32
    %c0_i32_1 = arith.constant 0 : i32
    return %c0_i32, %c0_i32_0 : i32, i32
  }
  func.func @transform_6(%arg0: i32) -> (i32, i32) {
    %c0_i32 = arith.constant 0 : i32
    %c0_i32_0 = arith.constant 0 : i32
    %c0_i32_1 = arith.constant 0 : i32
    return %c0_i32, %c0_i32_0 : i32, i32
  }
  func.func @transform_7(%arg0: i32) -> (i32, i32) {
    %c0_i32 = arith.constant 0 : i32
    %c0_i32_0 = arith.constant 0 : i32
    %c0_i32_1 = arith.constant 0 : i32
    return %c0_i32, %c0_i32_0 : i32, i32
  }
  func.func @transform_8(%arg0: i32) -> (i32, i32) {
    %c0_i32 = arith.constant 0 : i32
    %c0_i32_0 = arith.constant 0 : i32
    %c0_i32_1 = arith.constant 0 : i32
    return %c0_i32, %c0_i32_0 : i32, i32
  }
  func.func @transform_9(%arg0: i32) -> (i32, i32) {
    %c0_i32 = arith.constant 0 : i32
    %c0_i32_0 = arith.constant 0 : i32
    %c0_i32_1 = arith.constant 0 : i32
    return %c0_i32, %c0_i32_0 : i32, i32
  }
  func.func @transform_10(%arg0: i32) -> (i32, i32) {
    %c0_i32 = arith.constant 0 : i32
    %c0_i32_0 = arith.constant 0 : i32
    %c0_i32_1 = arith.constant 0 : i32
    return %c0_i32, %c0_i32_0 : i32, i32
  }
  func.func @transform_11(%arg0: i32) -> (i32, i32) {
    %c0_i32 = arith.constant 0 : i32
    %c0_i32_0 = arith.constant 0 : i32
    %c0_i32_1 = arith.constant 0 : i32
    return %c0_i32, %c0_i32_0 : i32, i32
  }
  func.func @transform_12(%arg0: i32) -> (i32, i32) {
    %c0_i32 = arith.constant 0 : i32
    %c0_i32_0 = arith.constant 0 : i32
    %c0_i32_1 = arith.constant 0 : i32
    return %c0_i32, %c0_i32_0 : i32, i32
  }
  func.func @transform_13(%arg0: i32) -> (i32, i32) {
    %c0_i32 = arith.constant 0 : i32
    %c0_i32_0 = arith.constant 0 : i32
    %c0_i32_1 = arith.constant 0 : i32
    return %c0_i32, %c0_i32_0 : i32, i32
  }
  func.func @transform_14(%arg0: i32) -> (i32, i32) {
    %c0_i32 = arith.constant 0 : i32
    %c0_i32_0 = arith.constant 0 : i32
    %c0_i32_1 = arith.constant 0 : i32
    return %c0_i32, %c0_i32_0 : i32, i32
  }
  func.func @transform_15(%arg0: i32) -> (i32, i32) {
    %c0_i32 = arith.constant 0 : i32
    %c0_i32_0 = arith.constant 0 : i32
    return %arg0, %c0_i32 : i32, i32
  }
}

</mosaic_0001>

<bundles_post_ra>
// kernel: policy_forward.1
= control target key start
LH: loop header
LB: loop body
LE: loop exit
PB: predicated region body
PF: predicated region fallthrough
CT: control target
= control target key end

     0   :  { %vm64_vm0 = vcmask 1043456   ;;  %v650_v0 = vmov 0.0   ;;  %vm651_vm1 = vmmov 0   ;;  %vm60_vm2 = vcmask 97280   ;;  %s918_s1 = inlined_call_operand.vmem [shape: f32[12,64], index: 1, kind: input, shape index: {}]   ;;  %s919_s0 = inlined_call_operand.vmem [shape: f32[8,12], index: 0, kind: input, shape index: {}]   ;;  %s920_s2 = inlined_call_operand.vmem [shape: f32[1,64], index: 2, kind: input, shape index: {}]   ;;  %s921_s5 = inlined_call_operand.vmem [shape: f32[64,128], index: 5, kind: input, shape index: {}]   ;;  %s922_s3 = inlined_call_operand.vmem [shape: f32[1,64], index: 3, kind: input, shape index: {}]   ;;  %s923_s4 = inlined_call_operand.vmem [shape: f32[1,64], index: 4, kind: input, shape index: {}]   ;;  %s924_s6 = inlined_call_operand.vmem [shape: f32[1,128], index: 6, kind: input, shape index: {}]   ;;  %s925_s9 = inlined_call_operand.vmem [shape: f32[128,64], index: 9, kind: input, shape index: {}]   ;;  %s926_s7 = inlined_call_operand.vmem [shape: f32[1,128], index: 7, kind: input, shape index: {}]   ;;  %s927_s8 = inlined_call_operand.vmem [shape: f32[1,128], index: 8, kind: input, shape index: {}]   ;;  %s928_s10 = inlined_call_operand.vmem [shape: f32[1,64], index: 10, kind: input, shape index: {}]   ;;  %s929_s13 = inlined_call_operand.vmem [shape: f32[64,6], index: 13, kind: input, shape index: {}]   ;;  %s930_s11 = inlined_call_operand.vmem [shape: f32[1,64], index: 11, kind: input, shape index: {}]   ;;  %s931_s12 = inlined_call_operand.vmem [shape: f32[1,64], index: 12, kind: input, shape index: {}]   ;;  %s932_s14 = inlined_call_operand.vmem [shape: f32[1,6], index: 14, kind: input, shape index: {}]   ;;  %s933_s15 = inlined_call_operand.vmem [shape: f32[8,6], index: 15, kind: output, shape index: {}]  }
   0x1   :  { %562 = vmatprep.subr.mxu0 %v650_v0  ;;  %v52_v1 = vld [vmem:[%s918_s1 + $0x8] sm:$0xf]  ;;  %v51_v2 = vld [vmem:[%s918_s1] sm:$0xff]  ;;  %566 = vmatprep.mubr.msk.f32.mxu0 %vm651_vm1, %v650_v0  ;;  %vm140_vm3 = vcmask 523264   ;;  %v177_v14 = vld [vmem:[%s921_s5 + $0x38] sm:$0xff]  ;;  %vm504_vm5 = vcmask 48128  }
   0x2   :  { %563 = vmatpush3.msk.msra.mxu0 %vm64_vm0, %v52_v1  ;;  %v50_v3 = vld [vmem:[%s919_s0] sm:$0xff]  ;;  %569 = vmatprep.subr.mxu1 %v650_v0  ;;  %v176_v15 = vld [vmem:[%s921_s5 + $0x30] sm:$0xff]  ;;  %v175_v16 = vld [vmem:[%s921_s5 + $0x28] sm:$0xff] }
   0x3   :  { %564 = vmatprep.subr.mxu0 %v650_v0  ;;  %585 = vmatprep.mubr.msk.f32.mxu1 %vm651_vm1, %v650_v0  ;;  %v510_v4 = vld [vmem:[%s920_s2] ss:$0 sm:$0xff]  ;;  %v173_v18 = vld [vmem:[%s921_s5 + $0x18] sm:$0xff]  ;;  %v172_v19 = vld [vmem:[%s921_s5 + $0x10] sm:$0xff] }
   0x4   :  { %565 = vmatpush3.msra.mxu0 %v51_v2  ;;  %570 = vmatpush3.msra.mxu1 %v177_v14  ;;  %v174_v17 = vld [vmem:[%s921_s5 + $0x20] sm:$0xff]  ;;  %v171_v20 = vld [vmem:[%s921_s5 + $0x8] sm:$0xff]  ;;  %v302_v36 = vld [vmem:[%s925_s9 + $0x78] sm:$0xff] }
   0x5   :  { %567 = vmatmul.mubr.msk.f32.vlgmr.msra.gmra.mxu0 %vm60_vm2, %v50_v3  ;;  %588 = vmatprep.subr.mxu0 %v650_v0  ;;  %v170_v21 = vld [vmem:[%s921_s5] sm:$0xff]  ;;  %v301_v37 = vld [vmem:[%s925_s9 + $0x70] sm:$0xff]  ;;  %v300_v38 = vld [vmem:[%s925_s9 + $0x68] sm:$0xff] }
   0x6   :  { %620 = vmatprep.mubr.msk.f32.mxu0 %vm651_vm1, %v650_v0  ;;  %571 = vmatprep.subr.mxu1 %v650_v0  ;;  %v513_v26 = vld [vmem:[%s922_s3] ss:$0 sm:$0xff]  ;;  %v298_v44 = vld [vmem:[%s925_s9 + $0x58] sm:$0xff]  ;;  %v297_v45 = vld [vmem:[%s925_s9 + $0x50] sm:$0xff] }
   0x7   :  { %572 = vmatpush3.msra.mxu1 %v176_v15  ;;  %v514_v28 = vld [vmem:[%s923_s4] ss:$0 sm:$0xff]  ;;  %589 = vmatpush3.msra.mxu0 %v302_v36  ;;  %v296_v46 = vld [vmem:[%s925_s9 + $0x48] sm:$0xff]  ;;  %v294_v48 = vld [vmem:[%s925_s9 + $0x38] sm:$0xff] }
   0x8   :  { %573 = vmatprep.subr.mxu1 %v650_v0  ;;  %v515_v32 = vld [vmem:[%s924_s6] ss:$0 sm:$0xff]  ;;  %590 = vmatprep.subr.mxu0 %v650_v0  ;;  %v293_v49 = vld [vmem:[%s925_s9 + $0x30] sm:$0xff]  ;;  %v292_v50 = vld [vmem:[%s925_s9 + $0x28] sm:$0xff] }
   0x9   :  { %574 = vmatpush3.msra.mxu1 %v175_v16  ;;  %591 = vmatpush3.msra.mxu0 %v301_v37  ;;  %v299_v43 = vld [vmem:[%s925_s9 + $0x60] sm:$0xff]  ;;  %v290_v52 = vld [vmem:[%s925_s9 + $0x18] sm:$0xff]  ;;  %v289_v53 = vld [vmem:[%s925_s9 + $0x10] sm:$0xff] }
   0xa   :  { %575 = vmatprep.subr.mxu1 %v650_v0  ;;  %592 = vmatprep.subr.mxu0 %v650_v0  ;;  %v295_v47 = vld [vmem:[%s925_s9 + $0x40] sm:$0xff]  ;;  %v288_v54 = vld [vmem:[%s925_s9 + $0x8] sm:$0xff]  ;;  %v416_v14 = vld [vmem:[%s929_s13 + $0x30] sm:$0xff] }
   0xb   :  { %576 = vmatpush3.msra.mxu1 %v174_v17  ;;  %593 = vmatpush3.msra.mxu0 %v300_v38  ;;  %v291_v51 = vld [vmem:[%s925_s9 + $0x20] sm:$0xff]  ;;  %v415_v15 = vld [vmem:[%s929_s13 + $0x28] sm:$0xff]  ;;  %v413_v17 = vld [vmem:[%s929_s13 + $0x18] sm:$0xff] }
   0xc   :  { %577 = vmatprep.subr.mxu1 %v650_v0  ;;  %594 = vmatprep.subr.mxu0 %v650_v0  ;;  %v287_v55 = vld [vmem:[%s925_s9] sm:$0xff] }
   0xd   :  { %578 = vmatpush3.msra.mxu1 %v173_v18  ;;  %595 = vmatpush3.msra.mxu0 %v299_v43  ;;  %v517_v60 = vld [vmem:[%s926_s7] ss:$0 sm:$0xff]  ;;  %v412_v18 = vld [vmem:[%s929_s13 + $0x10] sm:$0xff] }
   0xe   :  { %579 = vmatprep.subr.mxu1 %v650_v0  ;;  %596 = vmatprep.subr.mxu0 %v650_v0  ;;  %v518_v62 = vld [vmem:[%s927_s8] ss:$0 sm:$0xff] }
   0xf   :  { %580 = vmatpush3.msra.mxu1 %v172_v19  ;;  %597 = vmatpush3.msra.mxu0 %v298_v44  ;;  %v519_v3 = vld [vmem:[%s928_s10] ss:$0 sm:$0xff]  ;;  %v411_v19 = vld [vmem:[%s929_s13 + $0x8] sm:$0xff] }
  0x10   :  { %581 = vmatprep.subr.mxu1 %v650_v0  ;;  %598 = vmatprep.subr.mxu0 %v650_v0  ;;  %v414_v16 = vld [vmem:[%s929_s13 + $0x20] sm:$0xff] }
  0x11   :  { %582 = vmatpush3.msra.mxu1 %v171_v20  ;;  %599 = vmatpush3.msra.mxu0 %v297_v45  ;;  %v410_v20 = vld [vmem:[%s929_s13] sm:$0xff] }
  0x12   :  { %583 = vmatprep.subr.mxu1 %v650_v0  ;;  %600 = vmatprep.subr.mxu0 %v650_v0 }
  0x13   :  { %584 = vmatpush3.msra.mxu1 %v170_v21  ;;  %601 = vmatpush3.msra.mxu0 %v296_v46 }
  0x14   :  { %623 = vmatprep.subr.mxu1 %v650_v0  ;;  %602 = vmatprep.subr.mxu0 %v650_v0 }
  0x15   :  { %603 = vmatpush3.msra.mxu0 %v295_v47 }
  0x16   :  { %604 = vmatprep.subr.mxu0 %v650_v0 }
  0x17   :  { %605 = vmatpush3.msra.mxu0 %v294_v48 }
  0x18   :  { %606 = vmatprep.subr.mxu0 %v650_v0 }
  0x19   :  { %607 = vmatpush3.msra.mxu0 %v293_v49 }
  0x1a   :  { %608 = vmatprep.subr.mxu0 %v650_v0 }
  0x1b   :  { %609 = vmatpush3.msra.mxu0 %v292_v50 }
  0x1c   :  { %610 = vmatprep.subr.mxu0 %v650_v0 }
  0x1d   :  { %611 = vmatpush3.msra.mxu0 %v291_v51 }
  0x1e   :  { %612 = vmatprep.subr.mxu0 %v650_v0 }
  0x1f   :  { %613 = vmatpush3.msra.mxu0 %v290_v52 }
  0x20   :  { %614 = vmatprep.subr.mxu0 %v650_v0 }
  0x21   :  { %615 = vmatpush3.msra.mxu0 %v289_v53 }
  0x22   :  { %616 = vmatprep.subr.mxu0 %v650_v0 }
  0x23   :  { %617 = vmatpush3.msra.mxu0 %v288_v54 }
  0x24   :  { %618 = vmatprep.subr.mxu0 %v650_v0 }
  0x25   :  { %619 = vmatpush3.msra.mxu0 %v287_v55 }
  0xc5   :  { %v134_v5 = vpop.f32.mrf.mxu0 }
  0xc6   :  { %v135_v6 = vadd.f32 %v510_v4, %v134_v5 }
  0xc7   :  { %v568_v7 = vpop.f32.mrf.mxu0 }
  0xc8   :  { %v141_v8 = vsel %vm140_vm3, %v135_v6, 0.0 }
  0xc9   :  { %142 = vadd.xlane.f32.xlu0 %v141_v8 }
 0x152   :  { %v143_v9 = vpop.xlane.xlu0 %142 }
 0x153   :  { %v145_v10 = vmul.f32 0.015625, %v143_v9 }
 0x155   :  { %v146_v11 = vsub.f32 %v135_v6, %v145_v10 }
 0x157   :  { %v147_v12 = vmul.f32 %v146_v11, %v146_v11 }
 0x159   :  { %v148_v13 = vsel %vm140_vm3, %v147_v12, 0.0 }
 0x15a   :  { %149 = vadd.xlane.f32.xlu0 %v148_v13  ;;  %v417_v13 = vld [vmem:[%s929_s13 + $0x38] sm:$0xff] }
 0x1e3   :  { %v150_v22 = vpop.xlane.xlu0 %149 }
 0x1e4   :  { %v151_v23 = vmul.f32 0.015625, %v150_v22 }
 0x1e6   :  { %v152_v24 = vadd.f32 1e-05, %v151_v23 }
 0x1e8   :  { %644 = vrsqrt.f32 %v152_v24 }
 0x1f5   :  { %v645_v25 = vpop.eup %644 }
 0x1f6   :  { %v154_v27 = vmul.f32 %v645_v25, %v146_v11  ;;  %v520_v25 = vld [vmem:[%s930_s11] ss:$0 sm:$0xff] }
 0x1f8   :  { %v161_v29 = vmul.f32 %v513_v26, %v154_v27  ;;  %v521_v27 = vld [vmem:[%s931_s12] ss:$0 sm:$0xff] }
 0x1fa   :  { %v168_v30 = vadd.f32 %v514_v28, %v161_v29 }
 0x1fc   :  { %v169_v31 = vmax.f32 %v168_v30, 0.0 }
 0x1fe   :  { %586 = vmatmul.mubr.msk.f32.vlgmr.msra.gmra.mxu1 %vm140_vm3, %v169_v31  ;;  %v522_v31 = vld [vmem:[%s932_s14] ss:$0 sm:$0xff] }
 0x1ff   :  { %639 = vmatprep.mubr.msk.f32.mxu1 %vm651_vm1, %v650_v0  ;;  %624 = vmatpush3.msra.mxu1 %v417_v13 }
 0x200   :  { %625 = vmatprep.subr.mxu1 %v650_v0 }
 0x201   :  { %626 = vmatpush3.msra.mxu1 %v416_v14 }
 0x202   :  { %627 = vmatprep.subr.mxu1 %v650_v0 }
 0x203   :  { %628 = vmatpush3.msra.mxu1 %v415_v15 }
 0x204   :  { %629 = vmatprep.subr.mxu1 %v650_v0 }
 0x205   :  { %630 = vmatpush3.msra.mxu1 %v414_v16 }
 0x206   :  { %631 = vmatprep.subr.mxu1 %v650_v0 }
 0x207   :  { %632 = vmatpush3.msra.mxu1 %v413_v17 }
 0x208   :  { %633 = vmatprep.subr.mxu1 %v650_v0 }
 0x209   :  { %634 = vmatpush3.msra.mxu1 %v412_v18 }
 0x20a   :  { %635 = vmatprep.subr.mxu1 %v650_v0 }
 0x20b   :  { %636 = vmatpush3.msra.mxu1 %v411_v19 }
 0x20c   :  { %637 = vmatprep.subr.mxu1 %v650_v0  ;;  %v498_v0 = vlaneseq }
 0x20d   :  { %638 = vmatpush3.msra.mxu1 %v410_v20 }
 0x2be   :  { %v254_v33 = vpop.f32.mrf.mxu1 }
 0x2bf   :  { %v255_v34 = vadd.f32 %v515_v32, %v254_v33  ;;  %v499_v33 = vand.u32 127, %v498_v0 }
 0x2c0   :  { %v587_v35 = vpop.f32.mrf.mxu1 }
 0x2c1   :  { %260 = vadd.xlane.f32.xlu1 %v255_v34  ;;  %vm500_vm4 = vcmp.ge.s32.totalorder %v499_v33, 3 }
 0x34a   :  { %v261_v39 = vpop.xlane.xlu1 %260 }
 0x34b   :  { %v263_v40 = vmul.f32 0.0078125, %v261_v39 }
 0x34d   :  { %v264_v41 = vsub.f32 %v255_v34, %v263_v40 }
 0x34f   :  { %v265_v42 = vmul.f32 %v264_v41, %v264_v41 }
 0x351   :  { %266 = vadd.xlane.f32.xlu1 %v265_v42 }
 0x3da   :  { %v267_v56 = vpop.xlane.xlu1 %266 }
 0x3db   :  { %v268_v57 = vmul.f32 0.0078125, %v267_v56 }
 0x3dd   :  { %v269_v58 = vadd.f32 1e-05, %v268_v57 }
 0x3df   :  { %646 = vrsqrt.f32 %v269_v58 }
 0x3ec   :  { %v647_v59 = vpop.eup %646 }
 0x3ed   :  { %v271_v61 = vmul.f32 %v647_v59, %v264_v41 }
 0x3ef   :  { %v278_v63 = vmul.f32 %v517_v60, %v271_v61 }
 0x3f1   :  { %v285_v1 = vadd.f32 %v518_v62, %v278_v63 }
 0x3f3   :  { %v286_v2 = vmax.f32 %v285_v1, 0.0 }
 0x3f5   :  { %621 = vmatmul.mubr.f32.vlgmr.msra.gmra.mxu0 %v286_v2 }
 0x4b5   :  { %v376_v4 = vpop.f32.mrf.mxu0 }
 0x4b6   :  { %v377_v5 = vadd.f32 %v519_v3, %v376_v4 }
 0x4b7   :  { %v622_v6 = vpop.f32.mrf.mxu0 }
 0x4b8   :  { %v382_v7 = vsel %vm140_vm3, %v377_v5, 0.0 }
 0x4b9   :  { %383 = vadd.xlane.f32.xlu0 %v382_v7 }
 0x542   :  { %v384_v8 = vpop.xlane.xlu0 %383 }
 0x543   :  { %v385_v9 = vmul.f32 0.015625, %v384_v8 }
 0x545   :  { %v386_v10 = vsub.f32 %v377_v5, %v385_v9 }
 0x547   :  { %v387_v11 = vmul.f32 %v386_v10, %v386_v10 }
 0x549   :  { %v388_v12 = vsel %vm140_vm3, %v387_v11, 0.0 }
 0x54a   :  { %389 = vadd.xlane.f32.xlu1 %v388_v12 }
 0x5d3   :  { %v390_v21 = vpop.xlane.xlu1 %389 }
 0x5d4   :  { %v391_v22 = vmul.f32 0.015625, %v390_v21 }
 0x5d6   :  { %v392_v23 = vadd.f32 1e-05, %v391_v22 }
 0x5d8   :  { %648 = vrsqrt.f32 %v392_v23 }
 0x5e5   :  { %v649_v24 = vpop.eup %648 }
 0x5e6   :  { %v394_v26 = vmul.f32 %v649_v24, %v386_v10 }
 0x5e8   :  { %v401_v28 = vmul.f32 %v520_v25, %v394_v26 }
 0x5ea   :  { %v408_v29 = vadd.f32 %v521_v27, %v401_v28 }
 0x5ec   :  { %v409_v30 = vmax.f32 %v408_v29, 0.0 }
 0x5ee   :  { %640 = vmatmul.mubr.msk.f32.vlgmr.msra.gmra.mxu1 %vm140_vm3, %v409_v30 }
 0x6ae   :  { %v494_v32 = vpop.f32.mrf.mxu1 }
 0x6af   :  { %v495_v34 = vadd.f32 %v522_v31, %v494_v32 }
 0x6b0   :  { %v641_v35 = vpop.f32.mrf.mxu1 }
 0x6b1   :  { %v501_v36 = vmax.f32 %v495_v34, -1.0 }
 0x6b3   :  { %v502_v37 = vmin.f32 %v501_v36, 2.0 }
 0x6b5   :  { %v503_v38 = vsel %vm500_vm4, %v502_v37, %v495_v34 }
 0x6b6   :  { %505 = vst.msk [vmem:[%s933_s15] sm:$0xff] %vm504_vm5, %v503_v38 }

</bundles_post_ra>
